<compile_context>
chip_gen: v5e
topology: v5e:2x2
jax: 0.10.0
libtpu: 0.0.40
codegen_flags: <defaults>
</compile_context>

<pallas_src>
import functools

import jax
import jax.numpy as jnp
from jax.experimental import pallas as pl
from jax.experimental.pallas import tpu as pltpu

_LANE = 128
_VMEM_TILE_BUDGET = 24 * 1024 * 1024  # bytes; double-buffered blocks stay under this


def _round_up(a, b):
    return ((a + b - 1) // b) * b


def _freq_mul_mean_kernel(x_ref, h_ref, y_ref, *, inv_c):
    """One (depth-block, batch, freq-tile) grid step.

    x_ref: (1, 2, C, tf)   real/imag planes of rfft2(x / max(x)) for one batch
    h_ref: (2, C, td, tf)  real/imag planes of rfft2(ifftshift(flip(pad(psf))))
    y_ref: (1, 2, td, tf)  channel-averaged complex product
    """
    num_c = h_ref.shape[1]
    td = y_ref.shape[2]
    tf = y_ref.shape[3]

    yr = jnp.zeros((td, tf), jnp.float32)
    yi = jnp.zeros((td, tf), jnp.float32)
    # Static unroll over the (small) channel axis: each step is plain VPU
    # elementwise work plus a (1, tf) -> (td, tf) sublane broadcast; no
    # cross-lane traffic and no mid-kernel relayouts.
    for c in range(num_c):
        xr = x_ref[0, 0, c:c + 1, :]      # (1, tf)
        xi = x_ref[0, 1, c:c + 1, :]
        hr = h_ref[0, c]                  # (td, tf)
        hi = h_ref[1, c]
        yr = yr + (xr * hr - xi * hi)
        yi = yi + (xr * hi + xi * hr)

    scale = jnp.float32(inv_c)
    y_ref[0, 0] = yr * scale
    y_ref[0, 1] = yi * scale


def _choose_tiles(C, D, F):
    """Pick depth block td and lane tile tf so double-buffered blocks fit VMEM."""
    td = D if D <= 8 else 8               # td == full D, or a multiple of 8
    d_pad = _round_up(D, td)
    nd = d_pad // td
    # f32 bytes per lane column across one x block + one h block + one y block.
    bytes_per_lane = 4 * (2 * C + 2 * C * td + 2 * td)
    max_lanes = max(_LANE, _VMEM_TILE_BUDGET // (2 * bytes_per_lane))
    tf = min(_round_up(F, _LANE), (max_lanes // _LANE) * _LANE)
    f_pad = _round_up(F, tf)
    nf = f_pad // tf
    return td, d_pad, nd, tf, f_pad, nf


def _freq_mul_mean(Xp, Hp, td, tf):
    """Xp: (B, 2, C, Fp), Hp: (2, C, Dp, Fp) -> Y: (B, 2, Dp, Fp)."""
    B, _, C, Fp = Xp.shape
    _, _, Dp, _ = Hp.shape
    nd = Dp // td
    nf = Fp // tf

    x_bytes = Xp.size * 4
    h_bytes = Hp.size * 4
    # Grid-order heuristic: the operand whose block index is invariant along the
    # inner grid axis stays VMEM-resident (fetched once); pick the order that
    # minimizes redundant HBM reads for this memory-bound kernel.
    if nd * x_bytes + h_bytes <= x_bytes + B * h_bytes:
        grid = (nd, B, nf)                      # PSF blocks resident, x streamed
        x_map = lambda dj, b, fi: (b, 0, 0, fi)
        h_map = lambda dj, b, fi: (0, 0, dj, fi)
        y_map = lambda dj, b, fi: (b, 0, dj, fi)
    else:
        grid = (B, nd, nf)                      # x blocks resident, PSF streamed
        x_map = lambda b, dj, fi: (b, 0, 0, fi)
        h_map = lambda b, dj, fi: (0, 0, dj, fi)
        y_map = lambda b, dj, fi: (b, 0, dj, fi)

    kernel = functools.partial(_freq_mul_mean_kernel, inv_c=float(1.0 / C))
    return pl.pallas_call(
        kernel,
        out_shape=jax.ShapeDtypeStruct((B, 2, Dp, Fp), jnp.float32),
        grid=grid,
        in_specs=[
            pl.BlockSpec((1, 2, C, tf), x_map),
            pl.BlockSpec((2, C, td, tf), h_map),
        ],
        out_specs=pl.BlockSpec((1, 2, td, tf), y_map),
        compiler_params=pltpu.CompilerParams(
            dimension_semantics=("parallel", "parallel", "parallel"),
            vmem_limit_bytes=32 * 1024 * 1024,
        ),
    )(Xp, Hp)


def deconv_forward(x, psf):
    """x: (B, C, H, W) f32 ; psf: (1, C, D, Kh, Kw) f32 -> (B, D, H, W) f32."""
    B, C, H, W = x.shape
    _, _, D, Kh, Kw = psf.shape
    Wf = W // 2 + 1
    F = H * Wf

    # Pad PSF to (H, W), flip spatially (conjugate PSF), ifftshift.
    pad_h = (H - Kh) // 2
    pad_w = (W - Kw) // 2
    # NOTE: parity is checked on the last dim only, mirroring the PyTorch module.
    if Kw % 2 == 1:
        pads = ((0, 0), (0, 0), (0, 0), (pad_h + 1, pad_h), (pad_w + 1, pad_w))
    else:
        pads = ((0, 0), (0, 0), (0, 0), (pad_h, pad_h), (pad_w, pad_w))
    psf_p = jnp.flip(jnp.pad(psf, pads), axis=(-2, -1))      # (1, C, D, H, W)

    M = jnp.max(x)   # unguarded global max, as in the torch code

    # TODO(synk): rfft2 / irfft2 / ifftshift have no Pallas primitive; kept in JAX.
    X = jnp.fft.rfft2(x / M)                                          # (B, C, H, Wf) c64
    Hc = jnp.fft.rfft2(jnp.fft.ifftshift(psf_p, axes=(-2, -1)))[0]    # (C, D, H, Wf) c64

    td, Dp, _, tf, Fp, _ = _choose_tiles(C, D, F)

    # Pack real/imag and flatten (H, Wf) into one lane-dense axis padded to Fp.
    Xp = jnp.stack(
        [jnp.real(X).astype(jnp.float32).reshape(B, C, F),
         jnp.imag(X).astype(jnp.float32).reshape(B, C, F)], axis=1)    # (B, 2, C, F)
    Xp = jnp.pad(Xp, ((0, 0), (0, 0), (0, 0), (0, Fp - F)))

    Hp = jnp.stack(
        [jnp.real(Hc).astype(jnp.float32).reshape(C, D, F),
         jnp.imag(Hc).astype(jnp.float32).reshape(C, D, F)], axis=0)   # (2, C, D, F)
    Hp = jnp.pad(Hp, ((0, 0), (0, 0), (0, Dp - D), (0, Fp - F)))

    # Pallas kernel: complex multiply + mean over channels, per frequency bin.
    Yp = _freq_mul_mean(Xp, Hp, td, tf)                                # (B, 2, Dp, Fp)

    Yr = Yp[:, 0, :D, :F].reshape(B, D, H, Wf)
    Yi = Yp[:, 1, :D, :F].reshape(B, D, H, Wf)
    y = jnp.fft.irfft2(jax.lax.complex(Yr, Yi))                        # (B, D, H, W)
    return y


def deconv_reference(x, psf):
    """Pure-JAX reference mirroring the (intended) PyTorch forward."""
    B, C, H, W = x.shape
    _, _, D, Kh, Kw = psf.shape
    pad_h = (H - Kh) // 2
    pad_w = (W - Kw) // 2
    if Kw % 2 == 1:
        pads = ((0, 0), (0, 0), (0, 0), (pad_h + 1, pad_h), (pad_w + 1, pad_w))
    else:
        pads = ((0, 0), (0, 0), (0, 0), (pad_h, pad_h), (pad_w, pad_w))
    psf_p = jnp.flip(jnp.pad(psf, pads), axis=(-2, -1))
    M = jnp.max(x)
    X = jnp.fft.rfft2(x / M)[:, :, None]                            # (B, C, 1, H, Wf)
    Hc = jnp.fft.rfft2(jnp.fft.ifftshift(psf_p, axes=(-2, -1)))     # (1, C, D, H, Wf)
    y = jnp.fft.irfft2(X * Hc)                                      # (B, C, D, H, W)
    return jnp.mean(y, axis=1)                                      # (B, D, H, W)


if __name__ == "__main__":
    key = jax.random.PRNGKey(0)
    kx, kp = jax.random.split(key)

    B, C, D, H, W = 2, 4, 3, 16, 16
    Kh = Kw = 5   # odd PSF -> exercises the odd-padding branch

    x = jax.random.normal(kx, (B, C, H, W), dtype=jnp.float32)
    psf = jax.random.normal(kp, (1, C, D, Kh, Kw), dtype=jnp.float32)

    y = jax.jit(deconv_forward)(x, psf)
    y = jax.block_until_ready(y)

    y_ref = deconv_reference(x, psf)
    assert y.shape == (B, D, H, W), y.shape
    assert y.dtype == jnp.float32, y.dtype
    err = float(jnp.max(jnp.abs(y - y_ref)))
    assert jnp.allclose(y, y_ref, rtol=1e-4, atol=1e-4), err

    print("KERNEL_OK")
</pallas_src>

<mosaic_0001>
module attributes {stable_mosaic.version = 11 : i64} {
  func.func @_freq_mul_mean_kernel(%arg0: i32, %arg1: i32, %arg2: i32, %arg3: memref<1x2x4x256xf32, #tpu.memory_space<vmem>>, %arg4: memref<2x4x3x256xf32, #tpu.memory_space<vmem>>, %arg5: memref<1x2x3x256xf32, #tpu.memory_space<vmem>>) attributes {dimension_semantics = [#tpu.dimension_semantics<parallel>, #tpu.dimension_semantics<parallel>, #tpu.dimension_semantics<parallel>], iteration_bounds = array<i64: 1, 2, 1>, scalar_prefetch = 0 : i64, scratch_operands = 0 : i64, tpu.core_type = #tpu.core_type<tc>, window_params = [{transform_indices = @transform_0, window_bounds = array<i64: 1, 2, 4, 256>}, {transform_indices = @transform_1, window_bounds = array<i64: 2, 4, 3, 256>}, {transform_indices = @transform_2, window_bounds = array<i64: 1, 2, 3, 256>}]} {
    %cst = arith.constant 0.000000e+00 : f32
    %0 = vector.broadcast %cst : f32 to vector<3x256xf32>
    %cst_0 = arith.constant 0.000000e+00 : f32
    %1 = vector.broadcast %cst_0 : f32 to vector<3x256xf32>
    %c0 = arith.constant 0 : index
    %c0_1 = arith.constant 0 : index
    %c0_2 = arith.constant 0 : index
    %c0_3 = arith.constant 0 : index
    %2 = vector.load %arg3[%c0, %c0_1, %c0_2, %c0_3] : memref<1x2x4x256xf32, #tpu.memory_space<vmem>>, vector<1x1x1x256xf32>
    %3 = vector.shape_cast %2 : vector<1x1x1x256xf32> to vector<1x256xf32>
    %c0_4 = arith.constant 0 : index
    %c1 = arith.constant 1 : index
    %c0_5 = arith.constant 0 : index
    %c0_6 = arith.constant 0 : index
    %4 = vector.load %arg3[%c0_4, %c1, %c0_5, %c0_6] : memref<1x2x4x256xf32, #tpu.memory_space<vmem>>, vector<1x1x1x256xf32>
    %5 = vector.shape_cast %4 : vector<1x1x1x256xf32> to vector<1x256xf32>
    %c0_7 = arith.constant 0 : index
    %c0_8 = arith.constant 0 : index
    %c0_9 = arith.constant 0 : index
    %c0_10 = arith.constant 0 : index
    %6 = vector.load %arg4[%c0_7, %c0_8, %c0_9, %c0_10] : memref<2x4x3x256xf32, #tpu.memory_space<vmem>>, vector<1x1x3x256xf32>
    %7 = vector.shape_cast %6 : vector<1x1x3x256xf32> to vector<3x256xf32>
    %c1_11 = arith.constant 1 : index
    %c0_12 = arith.constant 0 : index
    %c0_13 = arith.constant 0 : index
    %c0_14 = arith.constant 0 : index
    %8 = vector.load %arg4[%c1_11, %c0_12, %c0_13, %c0_14] : memref<2x4x3x256xf32, #tpu.memory_space<vmem>>, vector<1x1x3x256xf32>
    %9 = vector.shape_cast %8 : vector<1x1x3x256xf32> to vector<3x256xf32>
    %10 = vector.broadcast %3 : vector<1x256xf32> to vector<3x256xf32>
    %11 = arith.mulf %10, %7 : vector<3x256xf32>
    %12 = vector.broadcast %5 : vector<1x256xf32> to vector<3x256xf32>
    %13 = arith.mulf %12, %9 : vector<3x256xf32>
    %14 = arith.subf %11, %13 : vector<3x256xf32>
    %15 = arith.addf %0, %14 : vector<3x256xf32>
    %16 = vector.broadcast %3 : vector<1x256xf32> to vector<3x256xf32>
    %17 = arith.mulf %16, %9 : vector<3x256xf32>
    %18 = vector.broadcast %5 : vector<1x256xf32> to vector<3x256xf32>
    %19 = arith.mulf %18, %7 : vector<3x256xf32>
    %20 = arith.addf %17, %19 : vector<3x256xf32>
    %21 = arith.addf %1, %20 : vector<3x256xf32>
    %c0_15 = arith.constant 0 : index
    %c0_16 = arith.constant 0 : index
    %c1_17 = arith.constant 1 : index
    %c0_18 = arith.constant 0 : index
    %22 = vector.load %arg3[%c0_15, %c0_16, %c1_17, %c0_18] : memref<1x2x4x256xf32, #tpu.memory_space<vmem>>, vector<1x1x1x256xf32>
    %23 = vector.shape_cast %22 : vector<1x1x1x256xf32> to vector<1x256xf32>
    %c0_19 = arith.constant 0 : index
    %c1_20 = arith.constant 1 : index
    %c1_21 = arith.constant 1 : index
    %c0_22 = arith.constant 0 : index
    %24 = vector.load %arg3[%c0_19, %c1_20, %c1_21, %c0_22] : memref<1x2x4x256xf32, #tpu.memory_space<vmem>>, vector<1x1x1x256xf32>
    %25 = vector.shape_cast %24 : vector<1x1x1x256xf32> to vector<1x256xf32>
    %c0_23 = arith.constant 0 : index
    %c1_24 = arith.constant 1 : index
    %c0_25 = arith.constant 0 : index
    %c0_26 = arith.constant 0 : index
    %26 = vector.load %arg4[%c0_23, %c1_24, %c0_25, %c0_26] : memref<2x4x3x256xf32, #tpu.memory_space<vmem>>, vector<1x1x3x256xf32>
    %27 = vector.shape_cast %26 : vector<1x1x3x256xf32> to vector<3x256xf32>
    %c1_27 = arith.constant 1 : index
    %c1_28 = arith.constant 1 : index
    %c0_29 = arith.constant 0 : index
    %c0_30 = arith.constant 0 : index
    %28 = vector.load %arg4[%c1_27, %c1_28, %c0_29, %c0_30] : memref<2x4x3x256xf32, #tpu.memory_space<vmem>>, vector<1x1x3x256xf32>
    %29 = vector.shape_cast %28 : vector<1x1x3x256xf32> to vector<3x256xf32>
    %30 = vector.broadcast %23 : vector<1x256xf32> to vector<3x256xf32>
    %31 = arith.mulf %30, %27 : vector<3x256xf32>
    %32 = vector.broadcast %25 : vector<1x256xf32> to vector<3x256xf32>
    %33 = arith.mulf %32, %29 : vector<3x256xf32>
    %34 = arith.subf %31, %33 : vector<3x256xf32>
    %35 = arith.addf %15, %34 : vector<3x256xf32>
    %36 = vector.broadcast %23 : vector<1x256xf32> to vector<3x256xf32>
    %37 = arith.mulf %36, %29 : vector<3x256xf32>
    %38 = vector.broadcast %25 : vector<1x256xf32> to vector<3x256xf32>
    %39 = arith.mulf %38, %27 : vector<3x256xf32>
    %40 = arith.addf %37, %39 : vector<3x256xf32>
    %41 = arith.addf %21, %40 : vector<3x256xf32>
    %c0_31 = arith.constant 0 : index
    %c0_32 = arith.constant 0 : index
    %c2 = arith.constant 2 : index
    %c0_33 = arith.constant 0 : index
    %42 = vector.load %arg3[%c0_31, %c0_32, %c2, %c0_33] : memref<1x2x4x256xf32, #tpu.memory_space<vmem>>, vector<1x1x1x256xf32>
    %43 = vector.shape_cast %42 : vector<1x1x1x256xf32> to vector<1x256xf32>
    %c0_34 = arith.constant 0 : index
    %c1_35 = arith.constant 1 : index
    %c2_36 = arith.constant 2 : index
    %c0_37 = arith.constant 0 : index
    %44 = vector.load %arg3[%c0_34, %c1_35, %c2_36, %c0_37] : memref<1x2x4x256xf32, #tpu.memory_space<vmem>>, vector<1x1x1x256xf32>
    %45 = vector.shape_cast %44 : vector<1x1x1x256xf32> to vector<1x256xf32>
    %c0_38 = arith.constant 0 : index
    %c2_39 = arith.constant 2 : index
    %c0_40 = arith.constant 0 : index
    %c0_41 = arith.constant 0 : index
    %46 = vector.load %arg4[%c0_38, %c2_39, %c0_40, %c0_41] : memref<2x4x3x256xf32, #tpu.memory_space<vmem>>, vector<1x1x3x256xf32>
    %47 = vector.shape_cast %46 : vector<1x1x3x256xf32> to vector<3x256xf32>
    %c1_42 = arith.constant 1 : index
    %c2_43 = arith.constant 2 : index
    %c0_44 = arith.constant 0 : index
    %c0_45 = arith.constant 0 : index
    %48 = vector.load %arg4[%c1_42, %c2_43, %c0_44, %c0_45] : memref<2x4x3x256xf32, #tpu.memory_space<vmem>>, vector<1x1x3x256xf32>
    %49 = vector.shape_cast %48 : vector<1x1x3x256xf32> to vector<3x256xf32>
    %50 = vector.broadcast %43 : vector<1x256xf32> to vector<3x256xf32>
    %51 = arith.mulf %50, %47 : vector<3x256xf32>
    %52 = vector.broadcast %45 : vector<1x256xf32> to vector<3x256xf32>
    %53 = arith.mulf %52, %49 : vector<3x256xf32>
    %54 = arith.subf %51, %53 : vector<3x256xf32>
    %55 = arith.addf %35, %54 : vector<3x256xf32>
    %56 = vector.broadcast %43 : vector<1x256xf32> to vector<3x256xf32>
    %57 = arith.mulf %56, %49 : vector<3x256xf32>
    %58 = vector.broadcast %45 : vector<1x256xf32> to vector<3x256xf32>
    %59 = arith.mulf %58, %47 : vector<3x256xf32>
    %60 = arith.addf %57, %59 : vector<3x256xf32>
    %61 = arith.addf %41, %60 : vector<3x256xf32>
    %c0_46 = arith.constant 0 : index
    %c0_47 = arith.constant 0 : index
    %c3 = arith.constant 3 : index
    %c0_48 = arith.constant 0 : index
    %62 = vector.load %arg3[%c0_46, %c0_47, %c3, %c0_48] : memref<1x2x4x256xf32, #tpu.memory_space<vmem>>, vector<1x1x1x256xf32>
    %63 = vector.shape_cast %62 : vector<1x1x1x256xf32> to vector<1x256xf32>
    %c0_49 = arith.constant 0 : index
    %c1_50 = arith.constant 1 : index
    %c3_51 = arith.constant 3 : index
    %c0_52 = arith.constant 0 : index
    %64 = vector.load %arg3[%c0_49, %c1_50, %c3_51, %c0_52] : memref<1x2x4x256xf32, #tpu.memory_space<vmem>>, vector<1x1x1x256xf32>
    %65 = vector.shape_cast %64 : vector<1x1x1x256xf32> to vector<1x256xf32>
    %c0_53 = arith.constant 0 : index
    %c3_54 = arith.constant 3 : index
    %c0_55 = arith.constant 0 : index
    %c0_56 = arith.constant 0 : index
    %66 = vector.load %arg4[%c0_53, %c3_54, %c0_55, %c0_56] : memref<2x4x3x256xf32, #tpu.memory_space<vmem>>, vector<1x1x3x256xf32>
    %67 = vector.shape_cast %66 : vector<1x1x3x256xf32> to vector<3x256xf32>
    %c1_57 = arith.constant 1 : index
    %c3_58 = arith.constant 3 : index
    %c0_59 = arith.constant 0 : index
    %c0_60 = arith.constant 0 : index
    %68 = vector.load %arg4[%c1_57, %c3_58, %c0_59, %c0_60] : memref<2x4x3x256xf32, #tpu.memory_space<vmem>>, vector<1x1x3x256xf32>
    %69 = vector.shape_cast %68 : vector<1x1x3x256xf32> to vector<3x256xf32>
    %70 = vector.broadcast %63 : vector<1x256xf32> to vector<3x256xf32>
    %71 = arith.mulf %70, %67 : vector<3x256xf32>
    %72 = vector.broadcast %65 : vector<1x256xf32> to vector<3x256xf32>
    %73 = arith.mulf %72, %69 : vector<3x256xf32>
    %74 = arith.subf %71, %73 : vector<3x256xf32>
    %75 = arith.addf %55, %74 : vector<3x256xf32>
    %76 = vector.broadcast %63 : vector<1x256xf32> to vector<3x256xf32>
    %77 = arith.mulf %76, %69 : vector<3x256xf32>
    %78 = vector.broadcast %65 : vector<1x256xf32> to vector<3x256xf32>
    %79 = arith.mulf %78, %67 : vector<3x256xf32>
    %80 = arith.addf %77, %79 : vector<3x256xf32>
    %81 = arith.addf %61, %80 : vector<3x256xf32>
    %cst_61 = arith.constant 2.500000e-01 : f32
    %82 = vector.broadcast %cst_61 : f32 to vector<3x256xf32>
    %83 = arith.mulf %75, %82 : vector<3x256xf32>
    %c0_62 = arith.constant 0 : index
    %c0_63 = arith.constant 0 : index
    %c0_64 = arith.constant 0 : index
    %c0_65 = arith.constant 0 : index
    %84 = vector.load %arg5[%c0_62, %c0_63, %c0_64, %c0_65] : memref<1x2x3x256xf32, #tpu.memory_space<vmem>>, vector<1x1x3x256xf32>
    %85 = vector.shape_cast %84 : vector<1x1x3x256xf32> to vector<3x256xf32>
    %86 = vector.shape_cast %83 : vector<3x256xf32> to vector<1x1x3x256xf32>
    tpu.vector_store %arg5[%c0_62, %c0_63, %c0_64, %c0_65], %86 {strides = array<i32>} : memref<1x2x3x256xf32, #tpu.memory_space<vmem>>, vector<1x1x3x256xf32>,
    %cst_66 = arith.constant 2.500000e-01 : f32
    %87 = vector.broadcast %cst_66 : f32 to vector<3x256xf32>
    %88 = arith.mulf %81, %87 : vector<3x256xf32>
    %c0_67 = arith.constant 0 : index
    %c1_68 = arith.constant 1 : index
    %c0_69 = arith.constant 0 : index
    %c0_70 = arith.constant 0 : index
    %89 = vector.load %arg5[%c0_67, %c1_68, %c0_69, %c0_70] : memref<1x2x3x256xf32, #tpu.memory_space<vmem>>, vector<1x1x3x256xf32>
    %90 = vector.shape_cast %89 : vector<1x1x3x256xf32> to vector<3x256xf32>
    %91 = vector.shape_cast %88 : vector<3x256xf32> to vector<1x1x3x256xf32>
    tpu.vector_store %arg5[%c0_67, %c1_68, %c0_69, %c0_70], %91 {strides = array<i32>} : memref<1x2x3x256xf32, #tpu.memory_space<vmem>>, vector<1x1x3x256xf32>,
    return
  }
  func.func @transform_0(%arg0: i32, %arg1: i32, %arg2: i32) -> (i32, i32, i32, i32) {
    %c0_i32 = arith.constant 0 : i32
    %c0_i32_0 = arith.constant 0 : i32
    %c0_i32_1 = arith.constant 0 : i32
    return %arg1, %c0_i32, %c0_i32_0, %arg2 : i32, i32, i32, i32
  }
  func.func @transform_1(%arg0: i32, %arg1: i32, %arg2: i32) -> (i32, i32, i32, i32) {
    %c0_i32 = arith.constant 0 : i32
    %c0_i32_0 = arith.constant 0 : i32
    %c0_i32_1 = arith.constant 0 : i32
    return %c0_i32, %c0_i32_0, %arg0, %arg2 : i32, i32, i32, i32
  }
  func.func @transform_2(%arg0: i32, %arg1: i32, %arg2: i32) -> (i32, i32, i32, i32) {
    %c0_i32 = arith.constant 0 : i32
    %c0_i32_0 = arith.constant 0 : i32
    return %arg1, %c0_i32, %arg0, %arg2 : i32, i32, i32, i32
  }
}

</mosaic_0001>

<bundles_post_ra>
// kernel: reverse.2
= control target key start
LH: loop header
LB: loop body
LE: loop exit
PB: predicated region body
PF: predicated region fallthrough
CT: control target
= control target key end

     0   :  { %v2_v0 = vlaneseq  ;;  %s344_s0 = inlined_call_operand.vmem [shape: f32[1,4,3,8,16], index: 0, kind: input, shape index: {}]   ;;  %s345_s1 = inlined_call_operand.vmem [shape: f32[1,4,3,8,16], index: 1, kind: output, shape index: {}]  }
   0x2   :  { %v3_v1 = vsub.s32 15, %v2_v0 }
   0x4   :  { %4 = vset.pattern.permute.xlu0 %v3_v1 }
   0x5   :  { %261 = vset.pattern.permute.xlu2 %v3_v1  ;;  %260 = vset.pattern.permute.xlu1 %v3_v1  ;;  %v63_v2 = vld [vmem:[%s344_s0 + $0x20] sm:$0xff]  ;;  %v59_v3 = vld [vmem:[%s344_s0 + $0x10] sm:$0xff]  ;;  %v65_v5 = vld [vmem:[%s344_s0 + $0x28] sm:$0xff] }
   0x6   :  { %v55_v4 = vld [vmem:[%s344_s0] sm:$0xff]  ;;  %64 = vst [vmem:[#allocation0 + $0x20] sm:$0xff] %v63_v2  ;;  %v61_v6 = vld [vmem:[%s344_s0 + $0x18] sm:$0xff]  ;;  %v57_v7 = vld [vmem:[%s344_s0 + $0x8] sm:$0xff] }
   0x7   :  { %60 = vst [vmem:[#allocation0 + $0x10] sm:$0xff] %v59_v3  ;;  %v71_v8 = vld [vmem:[%s344_s0 + $0x40] sm:$0xff]  ;;  %v69_v9 = vld [vmem:[%s344_s0 + $0x38] sm:$0xff]  ;;  %v67_v10 = vld [vmem:[%s344_s0 + $0x30] sm:$0xff] }
   0x8   :  { %56 = vst [vmem:[#allocation0] sm:$0xff] %v55_v4  ;;  %v77_v11 = vld [vmem:[%s344_s0 + $0x58] sm:$0xff]  ;;  %v75_v13 = vld [vmem:[%s344_s0 + $0x50] sm:$0xff]  ;;  %v73_v15 = vld [vmem:[%s344_s0 + $0x48] sm:$0xff] }
   0x9   :  { %66 = vst [vmem:[#allocation0 + $0x28] sm:$0xff] %v65_v5 }
   0xa   :  { %62 = vst [vmem:[#allocation0 + $0x18] sm:$0xff] %v61_v6 }
   0xb   :  { %58 = vst [vmem:[#allocation0 + $0x8] sm:$0xff] %v57_v7 }
   0xc   :  { %72 = vst [vmem:[#allocation0 + $0x40] sm:$0xff] %v71_v8 }
   0xd   :  { %v111_v12 = vld [vmem:[#allocation0 + $0x27] ss:$-1 sm:$0xff]  ;;  %70 = vst [vmem:[#allocation0 + $0x38] sm:$0xff] %v69_v9 }
   0xe   :  { %112 = vperm.xlu2 %261, %v111_v12   ;;  %v97_v14 = vld [vmem:[#allocation0 + $0x17] ss:$-1 sm:$0xff]  ;;  %68 = vst [vmem:[#allocation0 + $0x30] sm:$0xff] %v67_v10 }
   0xf   :  { %98 = vperm.xlu1 %260, %v97_v14   ;;  %v83_v16 = vld [vmem:[#allocation0 + $0x7] ss:$-1 sm:$0xff]  ;;  %78 = vst [vmem:[#allocation0 + $0x58] sm:$0xff] %v77_v11 }
  0x10   :  { %84 = vperm.xlu0 %4, %v83_v16   ;;  %76 = vst [vmem:[#allocation0 + $0x50] sm:$0xff] %v75_v13  ;;  %v118_v17 = vld [vmem:[#allocation0 + $0x2f] ss:$-1 sm:$0xff] }
  0x11   :  { %74 = vst [vmem:[#allocation0 + $0x48] sm:$0xff] %v73_v15  ;;  %v104_v18 = vld [vmem:[#allocation0 + $0x1f] ss:$-1 sm:$0xff] }
  0x12   :  { %v90_v19 = vld [vmem:[#allocation0 + $0xf] ss:$-1 sm:$0xff] }
  0x13   :  { %v139_v20 = vld [vmem:[#allocation0 + $0x47] ss:$-1 sm:$0xff] }
  0x14   :  { %v132_v21 = vld [vmem:[#allocation0 + $0x3f] ss:$-1 sm:$0xff] }
  0x15   :  { %v125_v22 = vld [vmem:[#allocation0 + $0x37] ss:$-1 sm:$0xff] }
  0x16   :  { %119 = vperm.xlu2 %261, %v118_v17   ;;  %v160_v23 = vld [vmem:[#allocation0 + $0x5f] ss:$-1 sm:$0xff] }
  0x17   :  { %105 = vperm.xlu1 %260, %v104_v18   ;;  %v153_v24 = vld [vmem:[#allocation0 + $0x57] ss:$-1 sm:$0xff] }
  0x18   :  { %91 = vperm.xlu0 %4, %v90_v19   ;;  %v146_v25 = vld [vmem:[#allocation0 + $0x4f] ss:$-1 sm:$0xff] }
  0x1e   :  { %140 = vperm.xlu2 %261, %v139_v20  }
  0x1f   :  { %133 = vperm.xlu1 %260, %v132_v21  }
  0x20   :  { %126 = vperm.xlu0 %4, %v125_v22  }
  0x26   :  { %161 = vperm.xlu2 %261, %v160_v23  }
  0x27   :  { %154 = vperm.xlu1 %260, %v153_v24  }
  0x28   :  { %147 = vperm.xlu0 %4, %v146_v25  }
  0x68   :  { %v113_v26 = vpop.permute.xlu2 %112 }
  0x69   :  { %223 = vst [vmem:[%s345_s1 + $0x20] sm:$0xff] %v113_v26 }
  0x70   :  { %v120_v27 = vpop.permute.xlu2 %119 }
  0x71   :  { %225 = vst [vmem:[%s345_s1 + $0x28] sm:$0xff] %v120_v27 }
  0x78   :  { %v141_v28 = vpop.permute.xlu2 %140 }
  0x79   :  { %231 = vst [vmem:[%s345_s1 + $0x40] sm:$0xff] %v141_v28 }
  0x80   :  { %v162_v29 = vpop.permute.xlu2 %161 }
  0x81   :  { %237 = vst [vmem:[%s345_s1 + $0x58] sm:$0xff] %v162_v29  ;;  %v99_v30 = vpop.permute.xlu1 %98 }
  0x82   :  { %219 = vst [vmem:[%s345_s1 + $0x10] sm:$0xff] %v99_v30  ;;  %v85_v31 = vpop.permute.xlu0 %84 }
  0x83   :  { %215 = vst [vmem:[%s345_s1] sm:$0xff] %v85_v31 }
  0x89   :  { %v106_v32 = vpop.permute.xlu1 %105 }
  0x8a   :  { %221 = vst [vmem:[%s345_s1 + $0x18] sm:$0xff] %v106_v32  ;;  %v92_v33 = vpop.permute.xlu0 %91 }
  0x8b   :  { %217 = vst [vmem:[%s345_s1 + $0x8] sm:$0xff] %v92_v33 }
  0x91   :  { %v134_v34 = vpop.permute.xlu1 %133 }
  0x92   :  { %229 = vst [vmem:[%s345_s1 + $0x38] sm:$0xff] %v134_v34  ;;  %v127_v35 = vpop.permute.xlu0 %126 }
  0x93   :  { %227 = vst [vmem:[%s345_s1 + $0x30] sm:$0xff] %v127_v35 }
  0x99   :  { %v155_v36 = vpop.permute.xlu1 %154 }
  0x9a   :  { %235 = vst [vmem:[%s345_s1 + $0x50] sm:$0xff] %v155_v36  ;;  %v148_v37 = vpop.permute.xlu0 %147 }
  0x9b   :  { %233 = vst [vmem:[%s345_s1 + $0x48] sm:$0xff] %v148_v37 }

// kernel: reverse.0
= control target key start
LH: loop header
LB: loop body
LE: loop exit
PB: predicated region body
PF: predicated region fallthrough
CT: control target
= control target key end

     0   :  { %v64_v3 = vlaneseq  ;;  %v57_v6 = vld [vmem:[#allocation0 + $0x7] ss:$-1 sm:$0xff]  ;;  %v71_v7 = vld [vmem:[#allocation0 + $0x17] ss:$-1 sm:$0xff]  ;;  %s267_s0 = inlined_call_operand.vmem [shape: f32[2,3,16,7], index: 0, kind: input, shape index: {}]   ;;  %s268_s1 = inlined_call_operand.vmem [shape: f32[2,3,16,7], index: 1, kind: output, shape index: {}]  }
   0x1   :  { %v41_v0 = vld [vmem:[%s267_s0] sm:$0xff]  ;;  %v43_v1 = vld [vmem:[%s267_s0 + $0x8] sm:$0xff]  ;;  %v45_v2 = vld [vmem:[%s267_s0 + $0x10] sm:$0xff]  ;;  %v58_v9 = vrot.slane %v57_v6, 1  ;;  %v72_v12 = vrot.slane %v71_v7, 1 }
   0x2   :  { %42 = vst [vmem:[#allocation0 + $0x8] sm:$0xff] %v41_v0  ;;  %v47_v4 = vld [vmem:[%s267_s0 + $0x18] sm:$0xff]  ;;  %v49_v5 = vld [vmem:[%s267_s0 + $0x20] sm:$0xff]  ;;  %v51_v8 = vld [vmem:[%s267_s0 + $0x28] sm:$0xff]  ;;  %v65_v11 = vshrl.u32 %v64_v3, 7 }
   0x3   :  { %44 = vst [vmem:[#allocation0 + $0x18] sm:$0xff] %v43_v1  ;;  %v85_v10 = vld [vmem:[#allocation0 + $0x27] ss:$-1 sm:$0xff]  ;;  %v99_v13 = vld [vmem:[#allocation0 + $0x37] ss:$-1 sm:$0xff] }
   0x4   :  { %46 = vst [vmem:[#allocation0 + $0x28] sm:$0xff] %v45_v2  ;;  %v86_v14 = vrot.slane %v85_v10, 1  ;;  %v100_v15 = vrot.slane %v99_v13, 1  ;;  %vm66_vm0 = vcmp.lt.s32.totalorder %v65_v11, 7  ;;  %v113_v17 = vld [vmem:[#allocation0 + $0x47] ss:$-1 sm:$0xff] }
   0x5   :  { %48 = vst [vmem:[#allocation0 + $0x38] sm:$0xff] %v47_v4  ;;  %v127_v22 = vld [vmem:[#allocation0 + $0x57] ss:$-1 sm:$0xff]  ;;  %v114_v25 = vrot.slane %v113_v17, 1 }
   0x6   :  { %50 = vst [vmem:[#allocation0 + $0x48] sm:$0xff] %v49_v5  ;;  %v128_v29 = vrot.slane %v127_v22, 1 }
   0x7   :  { %52 = vst [vmem:[#allocation0 + $0x58] sm:$0xff] %v51_v8 }
   0x8   :  { %59 = vst [vmem:[#allocation1] sm:$0xff] %v58_v9 }
   0x9   :  { %v62_v16 = vld [vmem:[#allocation0 + $0xf] ss:$-1 sm:$0xff]  ;;  %73 = vst [vmem:[#allocation1 + $0x8] sm:$0xff] %v72_v12 }
   0xa   :  { %v63_v18 = vrot.slane %v62_v16, 1  ;;  %v76_v19 = vld [vmem:[#allocation0 + $0x1f] ss:$-1 sm:$0xff]  ;;  %87 = vst [vmem:[#allocation1 + $0x10] sm:$0xff] %v86_v14 }
   0xb   :  { %v77_v20 = vrot.slane %v76_v19, 1  ;;  %v90_v21 = vld [vmem:[#allocation0 + $0x2f] ss:$-1 sm:$0xff]  ;;  %101 = vst [vmem:[#allocation1 + $0x18] sm:$0xff] %v100_v15 }
   0xc   :  { %67 = vst.msk [vmem:[#allocation1] sm:$0xff] %vm66_vm0, %v63_v18  ;;  %v91_v23 = vrot.slane %v90_v21, 1  ;;  %v104_v24 = vld [vmem:[#allocation0 + $0x3f] ss:$-1 sm:$0xff] }
   0xd   :  { %81 = vst.msk [vmem:[#allocation1 + $0x8] sm:$0xff] %vm66_vm0, %v77_v20  ;;  %v105_v26 = vrot.slane %v104_v24, 1  ;;  %v118_v27 = vld [vmem:[#allocation0 + $0x4f] ss:$-1 sm:$0xff] }
   0xe   :  { %95 = vst.msk [vmem:[#allocation1 + $0x10] sm:$0xff] %vm66_vm0, %v91_v23  ;;  %v119_v28 = vrot.slane %v118_v27, 1  ;;  %v132_v30 = vld [vmem:[#allocation0 + $0x5f] ss:$-1 sm:$0xff] }
   0xf   :  { %109 = vst.msk [vmem:[#allocation1 + $0x18] sm:$0xff] %vm66_vm0, %v105_v26  ;;  %v133_v31 = vrot.slane %v132_v30, 1 }
  0x10   :  { %115 = vst [vmem:[#allocation1 + $0x20] sm:$0xff] %v114_v25 }
  0x11   :  { %123 = vst.msk [vmem:[#allocation1 + $0x20] sm:$0xff] %vm66_vm0, %v119_v28 }
  0x12   :  { %129 = vst [vmem:[#allocation1 + $0x28] sm:$0xff] %v128_v29 }
  0x13   :  { %137 = vst.msk [vmem:[#allocation1 + $0x28] sm:$0xff] %vm66_vm0, %v133_v31  ;;  %v176_v32 = vld [vmem:[#allocation1] sm:$0xff] }
  0x14   :  { %177 = vst [vmem:[%s268_s1] sm:$0xff] %v176_v32  ;;  %v178_v33 = vld [vmem:[#allocation1 + $0x8] sm:$0xff] }
  0x15   :  { %179 = vst [vmem:[%s268_s1 + $0x8] sm:$0xff] %v178_v33  ;;  %v180_v34 = vld [vmem:[#allocation1 + $0x10] sm:$0xff] }
  0x16   :  { %181 = vst [vmem:[%s268_s1 + $0x10] sm:$0xff] %v180_v34  ;;  %v182_v35 = vld [vmem:[#allocation1 + $0x18] sm:$0xff] }
  0x17   :  { %183 = vst [vmem:[%s268_s1 + $0x18] sm:$0xff] %v182_v35 }
  0x18   :  { %v184_v36 = vld [vmem:[#allocation1 + $0x20] sm:$0xff] }
  0x19   :  { %185 = vst [vmem:[%s268_s1 + $0x20] sm:$0xff] %v184_v36 }
  0x1a   :  { %v186_v37 = vld [vmem:[#allocation1 + $0x28] sm:$0xff] }
  0x1b   :  { %187 = vst [vmem:[%s268_s1 + $0x28] sm:$0xff] %v186_v37 }

// kernel: deconv_forward.1
= control target key start
LH: loop header
LB: loop body
LE: loop exit
PB: predicated region body
PF: predicated region fallthrough
CT: control target
= control target key end

     0   :  { %s698_s9 = smov 0   ;;  %s700_s10 = smov 0   ;;  %s882_s0 = inlined_call_operand.vmem [shape: f32[2,2,4,256], index: 0, kind: input, shape index: {}]   ;;  %s883_s1 = inlined_call_operand.vmem [shape: f32[2,4,3,256], index: 1, kind: input, shape index: {}]   ;;  %s884_s2 = inlined_call_operand.vmem [shape: f32[2,2,3,256], index: 2, kind: output, shape index: {}]  }
   0x1   :  { %s702_s11 = smov 0  }
   0x2 LB: > { %s27_s12 = sadd.s32 1, %s677_s10  ;;  %p611_p0 = scmp.ge.s32.totalorder %s681_s11, 1  ;;  %s681_s11 = sphi %s702_s11, %s12_s11   ;;  %s677_s10 = sphi %s700_s10, %s886_s10   ;;  %s673_s9 = sphi %s698_s9, %s885_s9  }
   0x3   : > { %p29_p1 = scmp.ge.s32.totalorder %s27_s12, 2  ;;  %p159_p2 = scmp.lt.s32.totalorder %s681_s11, 3 }
   0x5   : > { %s888_s12 = smov (%p29_p1, %s27_s12), 0  ;;  %p160_p3 = pnand %p611_p0, %p159_p2 }
   0x6   : > { %p203_p4 = scmp.lt.s32.totalorder (!%p160_p3), %s673_s9, 1 }
   0x7   : > { %163 = sbr.rel (%p160_p3) target bundleno = 153 (0x99), region = 28 }
   0xc   : > { %v239_v0 = vld [vmem:[%s883_s1] sm:$0x77]  ;;  %v620_v8 = vld [vmem:[%s883_s1 + $0x8] sm:$0x77]  ;;  %v624_v18 = vld [vmem:[%s883_s1 + $0x10] sm:$0x77] }
   0xd   : > { %248 = vst [vmem:[#allocation1] ss:$2 sm:$0xff] %v239_v0  ;;  %v617_v1 = vld [vmem:[%s883_s1 + $0x20] sm:$0x77]  ;;  %v621_v11 = vld [vmem:[%s883_s1 + $0x28] sm:$0x77] }
   0xe   : > { %v625_v21 = vld [vmem:[%s883_s1 + $0x30] sm:$0x77]  ;;  %s890_s9 = smov (!%p203_p4, %s673_s9), 1  ;;  %v772_v28 = vld [vmem:[%s883_s1 + $0x18] sm:$0x77]  ;;  %vm463_vm0 = vcmask 1043456  }
   0xf   : > { %s633_s25 = sshll.u32 %s890_s9, 4  ;;  %v629_v41 = vld [vmem:[%s883_s1 + $0x38] sm:$0x77] }
  0x10   : > { %s779_s30 = scalar_lea.vmem %s882_s0, %s633_s25  ;;  %s849_s7 = scalar_lea.vmem %s884_s2, %s633_s25 }
  0x11   : > { %v782_v29 = vld [vmem:[%s779_s30 + $0x9] ss:$4 sm:$0x3]  ;;  %v790_v32 = vld [vmem:[%s779_s30] ss:$4 sm:$0x3] }
  0x12   : > { %v793_v33 = vld [vmem:[%s779_s30 + $0x8] ss:$4 sm:$0x3]  ;;  %v796_v34 = vld [vmem:[%s779_s30 + $0x1] ss:$4 sm:$0x3] }
  0x13   : > { %v312_v35 = vperm.slane %v782_v29, 0  ;;  %v313_v36 = vperm.slane %v782_v29, 1  ;;  %v801_v37 = vld [vmem:[%s779_s30 + $0x2] ss:$4 sm:$0x3]  ;;  %v243_v39 = vperm.slane %v790_v32, 0 }
  0x14   : > { %v724_v2 = vld.sshfl [vmem:[#allocation1] sm:$0xff pattern:$0x75316420]  ;;  %v726_v3 = vld.sshfl [vmem:[#allocation1 + $0x8] sm:$0xff pattern:$0x75316420] }
  0x15   : > { %261 = vst [vmem:[#allocation1] ss:$2 sm:$0xff] %v617_v1  ;;  %v804_v38 = vld [vmem:[%s779_s30 + $0xa] ss:$4 sm:$0x3]  ;;  %v244_v40 = vperm.slane %v790_v32, 1  ;;  %v253_v60 = vmul.f32 %v724_v2, %v243_v39 }
  0x16   : > { %v256_v42 = vperm.slane %v793_v33, 0  ;;  %v257_v43 = vperm.slane %v793_v33, 1  ;;  %v299_v44 = vperm.slane %v796_v34, 0  ;;  %v300_v45 = vperm.slane %v796_v34, 1 }
  0x17   : > { %v355_v46 = vperm.slane %v801_v37, 0  ;;  %v356_v47 = vperm.slane %v801_v37, 1  ;;  %v368_v48 = vperm.slane %v804_v38, 0  ;;  %v369_v49 = vperm.slane %v804_v38, 1 }
  0x18   : > { %v822_v58 = vld [vmem:[%s779_s30 + $0x3] ss:$4 sm:$0x3]  ;;  %v825_v59 = vld [vmem:[%s779_s30 + $0xb] ss:$4 sm:$0x3]  ;;  %v254_v61 = vmul.f32 %v726_v3, %v244_v40 }
  0x19   : > { %v424_v2 = vperm.slane %v825_v59, 0 }
  0x1c   : > { %v728_v4 = vld.sshfl [vmem:[#allocation1] sm:$0xff pattern:$0x75316420]  ;;  %v730_v5 = vld.sshfl [vmem:[#allocation1 + $0x8] sm:$0xff pattern:$0x75316420] }
  0x1d   : > { %272 = vst [vmem:[#allocation1] ss:$2 sm:$0xff] %v617_v1  ;;  %v266_v54 = vmul.f32 %v728_v4, %v256_v42  ;;  %v267_v55 = vmul.f32 %v730_v5, %v257_v43 }
  0x1f   : > { %v269_v3 = vsub.f32 %v254_v61, %v267_v55 }
  0x24   : > { %v732_v6 = vld.sshfl [vmem:[#allocation1] sm:$0xff pattern:$0x75316420]  ;;  %v734_v7 = vld.sshfl [vmem:[#allocation1 + $0x8] sm:$0xff pattern:$0x75316420] }
  0x25   : > { %279 = vst [vmem:[#allocation1] ss:$2 sm:$0xff] %v239_v0 }
  0x2c   : > { %v739_v9 = vld.sshfl [vmem:[#allocation1] sm:$0xff pattern:$0x75316420]  ;;  %v741_v10 = vld.sshfl [vmem:[#allocation1 + $0x8] sm:$0xff pattern:$0x75316420] }
  0x2d   : > { %304 = vst [vmem:[#allocation1] ss:$2 sm:$0xff] %v620_v8  ;;  %v285_v61 = vmul.f32 %v741_v10, %v257_v43 }
  0x34   : > { %v305_v12 = vld.sshfl [vmem:[#allocation1] sm:$0xff pattern:$0x75316420]  ;;  %v306_v13 = vld.sshfl [vmem:[#allocation1 + $0x8] sm:$0xff pattern:$0x75316420] }
  0x35   : > { %317 = vst [vmem:[#allocation1] ss:$2 sm:$0xff] %v621_v11  ;;  %v309_v56 = vmul.f32 %v305_v12, %v299_v44  ;;  %v310_v57 = vmul.f32 %v306_v13, %v300_v45  ;;  %v425_v12 = vperm.slane %v825_v59, 1  ;;  %v268_v13 = vsub.f32 %v253_v60, %v266_v54 }
  0x3c   : > { %v318_v14 = vld.sshfl [vmem:[#allocation1] sm:$0xff pattern:$0x75316420]  ;;  %v319_v15 = vld.sshfl [vmem:[#allocation1 + $0x8] sm:$0xff pattern:$0x75316420] }
  0x3d   : > { %328 = vst [vmem:[#allocation1] ss:$2 sm:$0xff] %v621_v11  ;;  %v322_v52 = vmul.f32 %v318_v14, %v312_v35  ;;  %v323_v53 = vmul.f32 %v319_v15, %v313_v36  ;;  %v412_v11 = vperm.slane %v822_v58, 1 }
  0x3f   : > { %v324_v0 = vsub.f32 %v309_v56, %v322_v52  ;;  %v325_v1 = vsub.f32 %v310_v57, %v323_v53 }
  0x44   : > { %v746_v16 = vld.sshfl [vmem:[#allocation1] sm:$0xff pattern:$0x75316420]  ;;  %v748_v17 = vld.sshfl [vmem:[#allocation1 + $0x8] sm:$0xff pattern:$0x75316420] }
  0x45   : > { %335 = vst [vmem:[#allocation1] ss:$2 sm:$0xff] %v620_v8  ;;  %v411_v8 = vperm.slane %v822_v58, 0 }
  0x4c   : > { %v753_v19 = vld.sshfl [vmem:[#allocation1] sm:$0xff pattern:$0x75316420]  ;;  %v755_v20 = vld.sshfl [vmem:[#allocation1 + $0x8] sm:$0xff pattern:$0x75316420] }
  0x4d   : > { %360 = vst [vmem:[#allocation1] ss:$2 sm:$0xff] %v624_v18  ;;  %v340_v59 = vmul.f32 %v753_v19, %v312_v35  ;;  %v341_v60 = vmul.f32 %v755_v20, %v313_v36  ;;  %v334_v19 = vmul.f32 %v748_v17, %v300_v45  ;;  %v277_v36 = vmul.f32 %v732_v6, %v243_v39 }
  0x54   : > { %v361_v22 = vld.sshfl [vmem:[#allocation1] sm:$0xff pattern:$0x75316420]  ;;  %v362_v23 = vld.sshfl [vmem:[#allocation1 + $0x8] sm:$0xff pattern:$0x75316420] }
  0x55   : > { %373 = vst [vmem:[#allocation1] ss:$2 sm:$0xff] %v625_v21  ;;  %v365_v4 = vmul.f32 %v361_v22, %v355_v46  ;;  %v366_v5 = vmul.f32 %v362_v23, %v356_v47 }
  0x5c   : > { %v374_v24 = vld.sshfl [vmem:[#allocation1] sm:$0xff pattern:$0x75316420]  ;;  %v375_v25 = vld.sshfl [vmem:[#allocation1 + $0x8] sm:$0xff pattern:$0x75316420] }
  0x5d   : > { %384 = vst [vmem:[#allocation1] ss:$2 sm:$0xff] %v625_v21  ;;  %v378_v62 = vmul.f32 %v374_v24, %v368_v48  ;;  %v379_v63 = vmul.f32 %v375_v25, %v369_v49  ;;  %v326_v24 = vadd.f32 %v324_v0, %v268_v13  ;;  %v327_v25 = vadd.f32 %v325_v1, %v269_v3 }
  0x5f   : > { %v380_v14 = vsub.f32 %v365_v4, %v378_v62  ;;  %v381_v15 = vsub.f32 %v366_v5, %v379_v63  ;;  %v333_v62 = vmul.f32 %v746_v16, %v299_v44 }
  0x61   : > { %v382_v34 = vadd.f32 %v380_v14, %v326_v24  ;;  %v383_v38 = vadd.f32 %v381_v15, %v327_v25  ;;  %v342_v10 = vadd.f32 %v340_v59, %v333_v62 }
  0x64   : > { %v764_v26 = vld.sshfl [vmem:[#allocation1] sm:$0xff pattern:$0x75316420]  ;;  %v766_v27 = vld.sshfl [vmem:[#allocation1 + $0x8] sm:$0xff pattern:$0x75316420] }
  0x65   : > { %391 = vst [vmem:[#allocation1] ss:$2 sm:$0xff] %v624_v18  ;;  %v389_v16 = vmul.f32 %v764_v26, %v355_v46  ;;  %v390_v17 = vmul.f32 %v766_v27, %v356_v47 }
  0x6c   : > { %v784_v30 = vld.sshfl [vmem:[#allocation1] sm:$0xff pattern:$0x75316420]  ;;  %v786_v31 = vld.sshfl [vmem:[#allocation1 + $0x8] sm:$0xff pattern:$0x75316420] }
  0x6d   : > { %416 = vst [vmem:[#allocation1] ss:$2 sm:$0xff] %v772_v28  ;;  %v397_v35 = vmul.f32 %v786_v31, %v369_v49 }
  0x6f   : > { %v399_v44 = vadd.f32 %v397_v35, %v390_v17 }
  0x74   : > { %v417_v50 = vld.sshfl [vmem:[#allocation1] sm:$0xff pattern:$0x75316420]  ;;  %v418_v51 = vld.sshfl [vmem:[#allocation1 + $0x8] sm:$0xff pattern:$0x75316420] }
  0x75   : > { %429 = vst [vmem:[#allocation1] ss:$2 sm:$0xff] %v629_v41  ;;  %v421_v22 = vmul.f32 %v417_v50, %v411_v8  ;;  %v422_v29 = vmul.f32 %v418_v51, %v412_v11  ;;  %v284_v51 = vmul.f32 %v739_v9, %v256_v42  ;;  %v278_v9 = vmul.f32 %v734_v7, %v244_v40 }
  0x76   : > { %v343_v42 = vadd.f32 %v341_v60, %v334_v19 }
  0x77   : > { %v287_v31 = vadd.f32 %v285_v61, %v278_v9 }
  0x79   : > { %v345_v6 = vadd.f32 %v343_v42, %v287_v31 }
  0x7b   : > { %v401_v0 = vadd.f32 %v399_v44, %v345_v6 }
  0x7c   : > { %v430_v18 = vld.sshfl [vmem:[#allocation1] sm:$0xff pattern:$0x75316420]  ;;  %v431_v21 = vld.sshfl [vmem:[#allocation1 + $0x8] sm:$0xff pattern:$0x75316420] }
  0x7d   : > { %440 = vst [vmem:[#allocation1] ss:$2 sm:$0xff] %v629_v41  ;;  %v434_v23 = vmul.f32 %v430_v18, %v424_v2  ;;  %v435_v33 = vmul.f32 %v431_v21, %v425_v12 }
  0x7f   : > { %v436_v52 = vsub.f32 %v421_v22, %v434_v23  ;;  %v437_v53 = vsub.f32 %v422_v29, %v435_v33 }
  0x81   : > { %v438_v56 = vadd.f32 %v436_v52, %v382_v34  ;;  %v439_v57 = vadd.f32 %v437_v53, %v383_v38 }
  0x83   : > { %v459_v54 = vmul.f32 0.25, %v439_v57  ;;  %v458_v41 = vmul.f32 0.25, %v438_v56 }
  0x84   : > { %v441_v55 = vld.sshfl [vmem:[#allocation1] sm:$0xff pattern:$0x75316420]  ;;  %v442_v58 = vld.sshfl [vmem:[#allocation1 + $0x8] sm:$0xff pattern:$0x75316420] }
  0x85   : > { %447 = vst [vmem:[#allocation1] ss:$2 sm:$0xff] %v772_v28  ;;  %v462_v50 = vrot.slane %v459_v54, 4  ;;  %v396_v28 = vmul.f32 %v784_v30, %v368_v48  ;;  %v286_v30 = vadd.f32 %v284_v51, %v277_v36  ;;  %v445_v7 = vmul.f32 %v441_v55, %v411_v8 }
  0x86   : > { %v446_v40 = vmul.f32 %v442_v58, %v412_v11 }
  0x87   : > { %v464_v20 = vsel %vm463_vm0, %v458_v41, %v462_v50  ;;  %v398_v43 = vadd.f32 %v396_v28, %v389_v16  ;;  %v344_v45 = vadd.f32 %v342_v10, %v286_v30 }
  0x88   : > { %466 = vst [vmem:[%s849_s7] sm:$0x77] %v464_v20 }
  0x89   : > { %v400_v63 = vadd.f32 %v398_v43, %v344_v45 }
  0x8c   : > { %v448_v39 = vld.sshfl [vmem:[#allocation1] sm:$0xff pattern:$0x75316420]  ;;  %v449_v32 = vld.sshfl [vmem:[#allocation1 + $0x8] sm:$0xff pattern:$0x75316420] }
  0x8d   : > { %v452_v48 = vmul.f32 %v448_v39, %v424_v2  ;;  %v453_v49 = vmul.f32 %v449_v32, %v425_v12 }
  0x8f   : > { %v454_v26 = vadd.f32 %v452_v48, %v445_v7  ;;  %v455_v46 = vadd.f32 %v453_v49, %v446_v40 }
  0x91   : > { %v456_v37 = vadd.f32 %v454_v26, %v400_v63  ;;  %v457_v1 = vadd.f32 %v455_v46, %v401_v0 }
  0x93   : > { %v468_v27 = vmul.f32 0.25, %v457_v1  ;;  %v467_v47 = vmul.f32 0.25, %v456_v37 }
  0x95   : > { %v471_v4 = vrot.slane %v468_v27, 4 }
  0x97   : > { %v472_v5 = vsel %vm463_vm0, %v467_v47, %v471_v4 }
  0x98   : > { %630 = vst [vmem:[%s849_s7 + $0x8] sm:$0x77] %v472_v5 }
  0x99 PF: > { %s12_s11 = sadd.s32 1, %s681_s11   ;;  %s885_s9 = smov %s677_s10 }
  0x9a   : > { %p9_p5 = scmp.ge.s32.totalorder %s12_s11, 4   ;;  %s886_s10 = smov %s888_s12 }
  0x9c   :  { %11 = sbr.rel (!%p9_p5) target bundleno = 2 (0x2), region = 76 }

</bundles_post_ra>
